<compile_context>
chip_gen: v5e
topology: v5e:2x2
jax: 0.10.0
libtpu: 0.0.40
codegen_flags: <defaults>
</compile_context>

<pallas_src>
import math
from functools import partial

import jax
import jax.numpy as jnp
from jax.experimental import pallas as pl
from jax.experimental.pallas import tpu as pltpu


def _fused_attention_kernel(x_ref, w_ref, b_ref, o_ref, *, n_slices, m, bd, scale):
    """Single-step kernel.

    x_ref: (n_slices * m, bd)    rows = (t, n, m), lanes = (b, d)
    w_ref: (bd, 3 * bd)          block-diagonal fused QKV weight (already W.T per block)
    b_ref: (1, 3 * bd)           fused QKV bias (tiled over b)
    o_ref: (m, n_slices * bd)    lanes = (t, n, b, d)   -> 384 lanes here (3 * 128)
    """
    # One fused projection over every (b, t, n, m) row: (48, 64) @ (64, 192) on the MXU.
    qkv = jnp.dot(x_ref[...], w_ref[...],
                  preferred_element_type=jnp.float32) + b_ref[...]

    outs = []
    for s in range(n_slices):                      # static unroll over the T*N slices
        rows = qkv[s * m:(s + 1) * m, :]           # (m, 3*bd) static slice
        q2 = rows[:, 0 * bd:1 * bd]                # (m, b*d)
        k2 = rows[:, 1 * bd:2 * bd]
        v2 = rows[:, 2 * bd:3 * bd]

        # scores[m, k] = sum_{b,d} Q[b, m, d] * K[b, k, d] / sqrt(D)
        scores = jax.lax.dot_general(
            q2, k2, (((1,), (1,)), ((), ())),
            preferred_element_type=jnp.float32) * scale

        mx = jnp.max(scores, axis=-1, keepdims=True)
        e = jnp.exp(scores - mx)
        inv = pl.reciprocal(jnp.sum(e, axis=-1, keepdims=True), approx=False)
        w = e * inv

        # out[m, b*D + d] = sum_k w[m, k] * V[b, k, d]
        outs.append(jnp.dot(w, v2, preferred_element_type=jnp.float32))

    # Single lane-dense (8, 384) store.
    o_ref[...] = jnp.concatenate(outs, axis=-1).astype(o_ref.dtype)


def modality_attention(x, Wq, Wk, Wv, bq, bk, bv):
    """x: (B, T, N, M, D); W*: (D, D) nn.Linear weights (out, in); b*: (D,)."""
    B, T, N, M, D = x.shape
    BD = B * D
    TN = T * N

    # ---- wrapper-side layout plumbing (free; keeps the kernel reshape-free) ----
    # rows ordered (t, n, m); batch folded into the lane axis next to d.
    x_r = jnp.transpose(x, (1, 2, 3, 0, 4)).reshape(TN * M, BD)

    # Fused block-diagonal QKV weight: x_r @ w_fused == [Q | K | V] in (b*D) lanes.
    eye_b = jnp.eye(B, dtype=x.dtype)
    w_fused = jnp.concatenate(
        [jnp.kron(eye_b, Wq.T), jnp.kron(eye_b, Wk.T), jnp.kron(eye_b, Wv.T)],
        axis=1)                                                  # (BD, 3*BD)
    b_fused = jnp.concatenate(
        [jnp.tile(bq, B), jnp.tile(bk, B), jnp.tile(bv, B)]).reshape(1, 3 * BD)

    kernel = partial(_fused_attention_kernel,
                     n_slices=TN, m=M, bd=BD, scale=1.0 / math.sqrt(D))

    out_r = pl.pallas_call(
        kernel,
        out_shape=jax.ShapeDtypeStruct((M, TN * BD), x.dtype),
        grid=(1,),                                   # single step: no per-step overhead
        in_specs=[pl.BlockSpec((TN * M, BD), lambda i: (0, 0)),
                  pl.BlockSpec((BD, 3 * BD), lambda i: (0, 0)),
                  pl.BlockSpec((1, 3 * BD), lambda i: (0, 0))],
        out_specs=pl.BlockSpec((M, TN * BD), lambda i: (0, 0)),
        compiler_params=pltpu.CompilerParams(
            dimension_semantics=("arbitrary",)),
    )(x_r, w_fused, b_fused)

    # out_r[m, ((t*N + n)*B + b)*D + d]  ->  (B, T, N, M, D)
    return out_r.reshape(M, T, N, B, D).transpose(3, 1, 2, 0, 4)


def reference(x, Wq, Wk, Wv, bq, bk, bv):
    """Pure-JAX replica of the PyTorch forward (W* are (out, in) like nn.Linear)."""
    Q = jnp.einsum('btnmd,ed->btnme', x, Wq) + bq
    K = jnp.einsum('btnmd,ed->btnme', x, Wk) + bk
    V = jnp.einsum('btnmd,ed->btnme', x, Wv) + bv
    scores = jnp.einsum('btnmd,btnkd->tnmk', Q, K) / math.sqrt(Q.shape[-1])
    w = jax.nn.softmax(scores, axis=-1)
    return jnp.einsum('tnmk,btnkd->btnmd', w, V)


if __name__ == "__main__":
    B, T, N, M, D = 2, 2, 3, 8, 32  # dim = D = 32

    key = jax.random.PRNGKey(0)
    kx, kq, kk, kv, kbq, kbk, kbv = jax.random.split(key, 7)

    x = jax.random.normal(kx, (B, T, N, M, D), dtype=jnp.float32)

    # Deterministic synthetic nn.Linear parameters (weight shape (out, in)).
    scale = 1.0 / math.sqrt(D)
    Wq = jax.random.normal(kq, (D, D), dtype=jnp.float32) * scale
    Wk = jax.random.normal(kk, (D, D), dtype=jnp.float32) * scale
    Wv = jax.random.normal(kv, (D, D), dtype=jnp.float32) * scale
    bq = jax.random.normal(kbq, (D,), dtype=jnp.float32) * scale
    bk = jax.random.normal(kbk, (D,), dtype=jnp.float32) * scale
    bv = jax.random.normal(kbv, (D,), dtype=jnp.float32) * scale

    out = modality_attention(x, Wq, Wk, Wv, bq, bk, bv)
    out = jax.block_until_ready(out)

    ref = jax.block_until_ready(reference(x, Wq, Wk, Wv, bq, bk, bv))

    assert out.shape == (B, T, N, M, D), out.shape
    assert jnp.allclose(out, ref, atol=1e-4, rtol=1e-4), \
        f"max abs diff {jnp.max(jnp.abs(out - ref))}"

    print("KERNEL_OK")
</pallas_src>

<mosaic_0001>
module attributes {stable_mosaic.version = 11 : i64} {
  func.func @_fused_attention_kernel(%arg0: i32, %arg1: memref<48x64xf32, #tpu.memory_space<vmem>>, %arg2: memref<64x192xf32, #tpu.memory_space<vmem>>, %arg3: memref<1x192xf32, #tpu.memory_space<vmem>>, %arg4: memref<8x384xf32, #tpu.memory_space<vmem>>) attributes {dimension_semantics = [#tpu.dimension_semantics<arbitrary>], iteration_bounds = array<i64: 1>, scalar_prefetch = 0 : i64, scratch_operands = 0 : i64, tpu.core_type = #tpu.core_type<tc>, window_params = [{pipeline_mode = #tpu.pipeline_mode<synchronous>, transform_indices = @transform_0, window_bounds = array<i64: 48, 64>}, {pipeline_mode = #tpu.pipeline_mode<synchronous>, transform_indices = @transform_1, window_bounds = array<i64: 64, 192>}, {pipeline_mode = #tpu.pipeline_mode<synchronous>, transform_indices = @transform_2, window_bounds = array<i64: 1, 192>}, {pipeline_mode = #tpu.pipeline_mode<synchronous>, transform_indices = @transform_3, window_bounds = array<i64: 8, 384>}]} {
    %c0 = arith.constant 0 : index
    %c0_0 = arith.constant 0 : index
    %0 = vector.load %arg1[%c0, %c0_0] : memref<48x64xf32, #tpu.memory_space<vmem>>, vector<48x64xf32>
    %c0_1 = arith.constant 0 : index
    %c0_2 = arith.constant 0 : index
    %1 = vector.load %arg2[%c0_1, %c0_2] : memref<64x192xf32, #tpu.memory_space<vmem>>, vector<64x192xf32>
    %cst = arith.constant dense<0.000000e+00> : vector<48x192xf32>
    %2 = tpu.matmul %0, %1, %cst {dimension_numbers = #tpu.dot_dimension_numbers<[1], [0], [0], [1], [0, 0, 1, 1], [], []>} : vector<48x64xf32>, vector<64x192xf32>, vector<48x192xf32> -> vector<48x192xf32>
    %c0_3 = arith.constant 0 : index
    %c0_4 = arith.constant 0 : index
    %3 = vector.load %arg3[%c0_3, %c0_4] : memref<1x192xf32, #tpu.memory_space<vmem>>, vector<1x192xf32>
    %4 = vector.broadcast %3 : vector<1x192xf32> to vector<48x192xf32>
    %5 = arith.addf %2, %4 : vector<48x192xf32>
    %6 = vector.extract_strided_slice %5 {offsets = [0, 0], sizes = [8, 192], strides = [1, 1]} : vector<48x192xf32> to vector<8x192xf32>
    %7 = vector.extract_strided_slice %6 {offsets = [0, 0], sizes = [8, 64], strides = [1, 1]} : vector<8x192xf32> to vector<8x64xf32>
    %8 = vector.extract_strided_slice %6 {offsets = [0, 64], sizes = [8, 64], strides = [1, 1]} : vector<8x192xf32> to vector<8x64xf32>
    %9 = vector.extract_strided_slice %6 {offsets = [0, 128], sizes = [8, 64], strides = [1, 1]} : vector<8x192xf32> to vector<8x64xf32>
    %cst_5 = arith.constant dense<0.000000e+00> : vector<8x8xf32>
    %10 = tpu.matmul %7, %8, %cst_5 {dimension_numbers = #tpu.dot_dimension_numbers<[1], [1], [0], [0], [0, 0, 1, 0], [], []>} : vector<8x64xf32>, vector<8x64xf32>, vector<8x8xf32> -> vector<8x8xf32>
    %cst_6 = arith.constant 0.176776692 : f32
    %11 = vector.broadcast %cst_6 : f32 to vector<8x8xf32>
    %12 = arith.mulf %10, %11 : vector<8x8xf32>
    %cst_7 = arith.constant dense<0xFF800000> : vector<8xf32>
    %13 = vector.multi_reduction <maximumf>, %12, %cst_7 [1] : vector<8x8xf32> to vector<8xf32>
    %14 = vector.shape_cast %13 : vector<8xf32> to vector<8x1xf32>
    %15 = vector.broadcast %14 : vector<8x1xf32> to vector<8x8xf32>
    %16 = arith.subf %12, %15 : vector<8x8xf32>
    %17 = math.exp %16 : vector<8x8xf32>
    %cst_8 = arith.constant dense<0.000000e+00> : vector<8xf32>
    %18 = vector.multi_reduction <add>, %17, %cst_8 [1] : vector<8x8xf32> to vector<8xf32>
    %19 = vector.shape_cast %18 : vector<8xf32> to vector<8x1xf32>
    %20 = tpu.reciprocal %19 : vector<8x1xf32> -> vector<8x1xf32>
    %21 = vector.broadcast %20 : vector<8x1xf32> to vector<8x8xf32>
    %22 = arith.mulf %17, %21 : vector<8x8xf32>
    %cst_9 = arith.constant dense<0.000000e+00> : vector<8x64xf32>
    %23 = tpu.matmul %22, %9, %cst_9 {dimension_numbers = #tpu.dot_dimension_numbers<[1], [0], [0], [1], [0, 0, 1, 1], [], []>} : vector<8x8xf32>, vector<8x64xf32>, vector<8x64xf32> -> vector<8x64xf32>
    %24 = vector.extract_strided_slice %5 {offsets = [8, 0], sizes = [8, 192], strides = [1, 1]} : vector<48x192xf32> to vector<8x192xf32>
    %25 = vector.extract_strided_slice %24 {offsets = [0, 0], sizes = [8, 64], strides = [1, 1]} : vector<8x192xf32> to vector<8x64xf32>
    %26 = vector.extract_strided_slice %24 {offsets = [0, 64], sizes = [8, 64], strides = [1, 1]} : vector<8x192xf32> to vector<8x64xf32>
    %27 = vector.extract_strided_slice %24 {offsets = [0, 128], sizes = [8, 64], strides = [1, 1]} : vector<8x192xf32> to vector<8x64xf32>
    %cst_10 = arith.constant dense<0.000000e+00> : vector<8x8xf32>
    %28 = tpu.matmul %25, %26, %cst_10 {dimension_numbers = #tpu.dot_dimension_numbers<[1], [1], [0], [0], [0, 0, 1, 0], [], []>} : vector<8x64xf32>, vector<8x64xf32>, vector<8x8xf32> -> vector<8x8xf32>
    %cst_11 = arith.constant 0.176776692 : f32
    %29 = vector.broadcast %cst_11 : f32 to vector<8x8xf32>
    %30 = arith.mulf %28, %29 : vector<8x8xf32>
    %cst_12 = arith.constant dense<0xFF800000> : vector<8xf32>
    %31 = vector.multi_reduction <maximumf>, %30, %cst_12 [1] : vector<8x8xf32> to vector<8xf32>
    %32 = vector.shape_cast %31 : vector<8xf32> to vector<8x1xf32>
    %33 = vector.broadcast %32 : vector<8x1xf32> to vector<8x8xf32>
    %34 = arith.subf %30, %33 : vector<8x8xf32>
    %35 = math.exp %34 : vector<8x8xf32>
    %cst_13 = arith.constant dense<0.000000e+00> : vector<8xf32>
    %36 = vector.multi_reduction <add>, %35, %cst_13 [1] : vector<8x8xf32> to vector<8xf32>
    %37 = vector.shape_cast %36 : vector<8xf32> to vector<8x1xf32>
    %38 = tpu.reciprocal %37 : vector<8x1xf32> -> vector<8x1xf32>
    %39 = vector.broadcast %38 : vector<8x1xf32> to vector<8x8xf32>
    %40 = arith.mulf %35, %39 : vector<8x8xf32>
    %cst_14 = arith.constant dense<0.000000e+00> : vector<8x64xf32>
    %41 = tpu.matmul %40, %27, %cst_14 {dimension_numbers = #tpu.dot_dimension_numbers<[1], [0], [0], [1], [0, 0, 1, 1], [], []>} : vector<8x8xf32>, vector<8x64xf32>, vector<8x64xf32> -> vector<8x64xf32>
    %42 = vector.extract_strided_slice %5 {offsets = [16, 0], sizes = [8, 192], strides = [1, 1]} : vector<48x192xf32> to vector<8x192xf32>
    %43 = vector.extract_strided_slice %42 {offsets = [0, 0], sizes = [8, 64], strides = [1, 1]} : vector<8x192xf32> to vector<8x64xf32>
    %44 = vector.extract_strided_slice %42 {offsets = [0, 64], sizes = [8, 64], strides = [1, 1]} : vector<8x192xf32> to vector<8x64xf32>
    %45 = vector.extract_strided_slice %42 {offsets = [0, 128], sizes = [8, 64], strides = [1, 1]} : vector<8x192xf32> to vector<8x64xf32>
    %cst_15 = arith.constant dense<0.000000e+00> : vector<8x8xf32>
    %46 = tpu.matmul %43, %44, %cst_15 {dimension_numbers = #tpu.dot_dimension_numbers<[1], [1], [0], [0], [0, 0, 1, 0], [], []>} : vector<8x64xf32>, vector<8x64xf32>, vector<8x8xf32> -> vector<8x8xf32>
    %cst_16 = arith.constant 0.176776692 : f32
    %47 = vector.broadcast %cst_16 : f32 to vector<8x8xf32>
    %48 = arith.mulf %46, %47 : vector<8x8xf32>
    %cst_17 = arith.constant dense<0xFF800000> : vector<8xf32>
    %49 = vector.multi_reduction <maximumf>, %48, %cst_17 [1] : vector<8x8xf32> to vector<8xf32>
    %50 = vector.shape_cast %49 : vector<8xf32> to vector<8x1xf32>
    %51 = vector.broadcast %50 : vector<8x1xf32> to vector<8x8xf32>
    %52 = arith.subf %48, %51 : vector<8x8xf32>
    %53 = math.exp %52 : vector<8x8xf32>
    %cst_18 = arith.constant dense<0.000000e+00> : vector<8xf32>
    %54 = vector.multi_reduction <add>, %53, %cst_18 [1] : vector<8x8xf32> to vector<8xf32>
    %55 = vector.shape_cast %54 : vector<8xf32> to vector<8x1xf32>
    %56 = tpu.reciprocal %55 : vector<8x1xf32> -> vector<8x1xf32>
    %57 = vector.broadcast %56 : vector<8x1xf32> to vector<8x8xf32>
    %58 = arith.mulf %53, %57 : vector<8x8xf32>
    %cst_19 = arith.constant dense<0.000000e+00> : vector<8x64xf32>
    %59 = tpu.matmul %58, %45, %cst_19 {dimension_numbers = #tpu.dot_dimension_numbers<[1], [0], [0], [1], [0, 0, 1, 1], [], []>} : vector<8x8xf32>, vector<8x64xf32>, vector<8x64xf32> -> vector<8x64xf32>
    %60 = vector.extract_strided_slice %5 {offsets = [24, 0], sizes = [8, 192], strides = [1, 1]} : vector<48x192xf32> to vector<8x192xf32>
    %61 = vector.extract_strided_slice %60 {offsets = [0, 0], sizes = [8, 64], strides = [1, 1]} : vector<8x192xf32> to vector<8x64xf32>
    %62 = vector.extract_strided_slice %60 {offsets = [0, 64], sizes = [8, 64], strides = [1, 1]} : vector<8x192xf32> to vector<8x64xf32>
    %63 = vector.extract_strided_slice %60 {offsets = [0, 128], sizes = [8, 64], strides = [1, 1]} : vector<8x192xf32> to vector<8x64xf32>
    %cst_20 = arith.constant dense<0.000000e+00> : vector<8x8xf32>
    %64 = tpu.matmul %61, %62, %cst_20 {dimension_numbers = #tpu.dot_dimension_numbers<[1], [1], [0], [0], [0, 0, 1, 0], [], []>} : vector<8x64xf32>, vector<8x64xf32>, vector<8x8xf32> -> vector<8x8xf32>
    %cst_21 = arith.constant 0.176776692 : f32
    %65 = vector.broadcast %cst_21 : f32 to vector<8x8xf32>
    %66 = arith.mulf %64, %65 : vector<8x8xf32>
    %cst_22 = arith.constant dense<0xFF800000> : vector<8xf32>
    %67 = vector.multi_reduction <maximumf>, %66, %cst_22 [1] : vector<8x8xf32> to vector<8xf32>
    %68 = vector.shape_cast %67 : vector<8xf32> to vector<8x1xf32>
    %69 = vector.broadcast %68 : vector<8x1xf32> to vector<8x8xf32>
    %70 = arith.subf %66, %69 : vector<8x8xf32>
    %71 = math.exp %70 : vector<8x8xf32>
    %cst_23 = arith.constant dense<0.000000e+00> : vector<8xf32>
    %72 = vector.multi_reduction <add>, %71, %cst_23 [1] : vector<8x8xf32> to vector<8xf32>
    %73 = vector.shape_cast %72 : vector<8xf32> to vector<8x1xf32>
    %74 = tpu.reciprocal %73 : vector<8x1xf32> -> vector<8x1xf32>
    %75 = vector.broadcast %74 : vector<8x1xf32> to vector<8x8xf32>
    %76 = arith.mulf %71, %75 : vector<8x8xf32>
    %cst_24 = arith.constant dense<0.000000e+00> : vector<8x64xf32>
    %77 = tpu.matmul %76, %63, %cst_24 {dimension_numbers = #tpu.dot_dimension_numbers<[1], [0], [0], [1], [0, 0, 1, 1], [], []>} : vector<8x8xf32>, vector<8x64xf32>, vector<8x64xf32> -> vector<8x64xf32>
    %78 = vector.extract_strided_slice %5 {offsets = [32, 0], sizes = [8, 192], strides = [1, 1]} : vector<48x192xf32> to vector<8x192xf32>
    %79 = vector.extract_strided_slice %78 {offsets = [0, 0], sizes = [8, 64], strides = [1, 1]} : vector<8x192xf32> to vector<8x64xf32>
    %80 = vector.extract_strided_slice %78 {offsets = [0, 64], sizes = [8, 64], strides = [1, 1]} : vector<8x192xf32> to vector<8x64xf32>
    %81 = vector.extract_strided_slice %78 {offsets = [0, 128], sizes = [8, 64], strides = [1, 1]} : vector<8x192xf32> to vector<8x64xf32>
    %cst_25 = arith.constant dense<0.000000e+00> : vector<8x8xf32>
    %82 = tpu.matmul %79, %80, %cst_25 {dimension_numbers = #tpu.dot_dimension_numbers<[1], [1], [0], [0], [0, 0, 1, 0], [], []>} : vector<8x64xf32>, vector<8x64xf32>, vector<8x8xf32> -> vector<8x8xf32>
    %cst_26 = arith.constant 0.176776692 : f32
    %83 = vector.broadcast %cst_26 : f32 to vector<8x8xf32>
    %84 = arith.mulf %82, %83 : vector<8x8xf32>
    %cst_27 = arith.constant dense<0xFF800000> : vector<8xf32>
    %85 = vector.multi_reduction <maximumf>, %84, %cst_27 [1] : vector<8x8xf32> to vector<8xf32>
    %86 = vector.shape_cast %85 : vector<8xf32> to vector<8x1xf32>
    %87 = vector.broadcast %86 : vector<8x1xf32> to vector<8x8xf32>
    %88 = arith.subf %84, %87 : vector<8x8xf32>
    %89 = math.exp %88 : vector<8x8xf32>
    %cst_28 = arith.constant dense<0.000000e+00> : vector<8xf32>
    %90 = vector.multi_reduction <add>, %89, %cst_28 [1] : vector<8x8xf32> to vector<8xf32>
    %91 = vector.shape_cast %90 : vector<8xf32> to vector<8x1xf32>
    %92 = tpu.reciprocal %91 : vector<8x1xf32> -> vector<8x1xf32>
    %93 = vector.broadcast %92 : vector<8x1xf32> to vector<8x8xf32>
    %94 = arith.mulf %89, %93 : vector<8x8xf32>
    %cst_29 = arith.constant dense<0.000000e+00> : vector<8x64xf32>
    %95 = tpu.matmul %94, %81, %cst_29 {dimension_numbers = #tpu.dot_dimension_numbers<[1], [0], [0], [1], [0, 0, 1, 1], [], []>} : vector<8x8xf32>, vector<8x64xf32>, vector<8x64xf32> -> vector<8x64xf32>
    %96 = vector.extract_strided_slice %5 {offsets = [40, 0], sizes = [8, 192], strides = [1, 1]} : vector<48x192xf32> to vector<8x192xf32>
    %97 = vector.extract_strided_slice %96 {offsets = [0, 0], sizes = [8, 64], strides = [1, 1]} : vector<8x192xf32> to vector<8x64xf32>
    %98 = vector.extract_strided_slice %96 {offsets = [0, 64], sizes = [8, 64], strides = [1, 1]} : vector<8x192xf32> to vector<8x64xf32>
    %99 = vector.extract_strided_slice %96 {offsets = [0, 128], sizes = [8, 64], strides = [1, 1]} : vector<8x192xf32> to vector<8x64xf32>
    %cst_30 = arith.constant dense<0.000000e+00> : vector<8x8xf32>
    %100 = tpu.matmul %97, %98, %cst_30 {dimension_numbers = #tpu.dot_dimension_numbers<[1], [1], [0], [0], [0, 0, 1, 0], [], []>} : vector<8x64xf32>, vector<8x64xf32>, vector<8x8xf32> -> vector<8x8xf32>
    %cst_31 = arith.constant 0.176776692 : f32
    %101 = vector.broadcast %cst_31 : f32 to vector<8x8xf32>
    %102 = arith.mulf %100, %101 : vector<8x8xf32>
    %cst_32 = arith.constant dense<0xFF800000> : vector<8xf32>
    %103 = vector.multi_reduction <maximumf>, %102, %cst_32 [1] : vector<8x8xf32> to vector<8xf32>
    %104 = vector.shape_cast %103 : vector<8xf32> to vector<8x1xf32>
    %105 = vector.broadcast %104 : vector<8x1xf32> to vector<8x8xf32>
    %106 = arith.subf %102, %105 : vector<8x8xf32>
    %107 = math.exp %106 : vector<8x8xf32>
    %cst_33 = arith.constant dense<0.000000e+00> : vector<8xf32>
    %108 = vector.multi_reduction <add>, %107, %cst_33 [1] : vector<8x8xf32> to vector<8xf32>
    %109 = vector.shape_cast %108 : vector<8xf32> to vector<8x1xf32>
    %110 = tpu.reciprocal %109 : vector<8x1xf32> -> vector<8x1xf32>
    %111 = vector.broadcast %110 : vector<8x1xf32> to vector<8x8xf32>
    %112 = arith.mulf %107, %111 : vector<8x8xf32>
    %cst_34 = arith.constant dense<0.000000e+00> : vector<8x64xf32>
    %113 = tpu.matmul %112, %99, %cst_34 {dimension_numbers = #tpu.dot_dimension_numbers<[1], [0], [0], [1], [0, 0, 1, 1], [], []>} : vector<8x8xf32>, vector<8x64xf32>, vector<8x64xf32> -> vector<8x64xf32>
    %114 = tpu.concatenate %23, %41, %59, %77, %95, %113 in 1 : vector<8x64xf32>, vector<8x64xf32>, vector<8x64xf32>, vector<8x64xf32>, vector<8x64xf32>, vector<8x64xf32> -> vector<8x384xf32>
    %c0_35 = arith.constant 0 : index
    %c0_36 = arith.constant 0 : index
    %115 = vector.load %arg4[%c0_35, %c0_36] : memref<8x384xf32, #tpu.memory_space<vmem>>, vector<8x384xf32>
    tpu.vector_store %arg4[%c0_35, %c0_36], %114 {strides = array<i32>} : memref<8x384xf32, #tpu.memory_space<vmem>>, vector<8x384xf32>,
    return
  }
  func.func @transform_0(%arg0: i32) -> (i32, i32) {
    %c0_i32 = arith.constant 0 : i32
    %c0_i32_0 = arith.constant 0 : i32
    %c0_i32_1 = arith.constant 0 : i32
    return %c0_i32, %c0_i32_0 : i32, i32
  }
  func.func @transform_1(%arg0: i32) -> (i32, i32) {
    %c0_i32 = arith.constant 0 : i32
    %c0_i32_0 = arith.constant 0 : i32
    %c0_i32_1 = arith.constant 0 : i32
    return %c0_i32, %c0_i32_0 : i32, i32
  }
  func.func @transform_2(%arg0: i32) -> (i32, i32) {
    %c0_i32 = arith.constant 0 : i32
    %c0_i32_0 = arith.constant 0 : i32
    %c0_i32_1 = arith.constant 0 : i32
    return %c0_i32, %c0_i32_0 : i32, i32
  }
  func.func @transform_3(%arg0: i32) -> (i32, i32) {
    %c0_i32 = arith.constant 0 : i32
    %c0_i32_0 = arith.constant 0 : i32
    %c0_i32_1 = arith.constant 0 : i32
    return %c0_i32, %c0_i32_0 : i32, i32
  }
}

</mosaic_0001>

<bundles_post_ra>
// kernel: tpu_custom_call.1
= control target key start
LH: loop header
LB: loop body
LE: loop exit
PB: predicated region body
PF: predicated region fallthrough
CT: control target
= control target key end

     0   :  { %8 = vsyncpa [#allocation3], 0  ;;  %s963_s0 = inlined_call_operand.hbm [shape: f32[48,64], index: 0, kind: input, shape index: {}]   ;;  %s964_s1 = inlined_call_operand.hbm [shape: f32[64,192], index: 1, kind: input, shape index: {}]   ;;  %s965_s2 = inlined_call_operand.hbm [shape: f32[1,192], index: 2, kind: input, shape index: {}]   ;;  %s966_s3 = inlined_call_operand.hbm [shape: f32[8,384], index: 3, kind: output, shape index: {}]  }
   0x1   :  { %9 = vsyncpa [#allocation6], 0  ;;  %s28_s14 = sshll.u32 %s964_s1, 4  ;;  %s29_s14 = int_to_ptr.hbm [resolvable:$true] %s28_s14 }
   0x2   :  { %10 = vsyncpa [#allocation4], 0  ;;  %s829_s15 = smov [#allocation5]   ;;  %s15_s19 = sshll.u32 %s963_s0, 4  ;;  %s16_s19 = int_to_ptr.hbm [resolvable:$true] %s15_s19 }
   0x3   :  { %s30_s16 = sshll.u32 %s829_s15, 4  ;;  %s830_s20 = smov 256   ;;  %s31_s16 = int_to_ptr.vmem [resolvable:$true] %s30_s16 }
   0x4   :  { %s831_s21 = smov 16   ;;  %s832_s22 = smov [#allocation2]  }
   0x5   :  { %36 = dma.hbm_to_vmem [thread:$0]  %s29_s14, 2048, %s31_s16, [#allocation6], %s830_s20, %s830_s20, %s831_s21  }
   0x6   :  { %s17_s23 = sshll.u32 %s832_s22, 4  ;;  %s833_s24 = smov 128   ;;  %s18_s23 = int_to_ptr.vmem [resolvable:$true] %s17_s23 }
   0x7   :  { %s834_s25 = smov 8   ;;  %s42_s27 = sshll.u32 %s965_s2, 4  ;;  %s43_s27 = int_to_ptr.hbm [resolvable:$true] %s42_s27 }
   0x8   :  { %23 = dma.hbm_to_vmem [thread:$0]  %s16_s19, 768, %s18_s23, [#allocation3], %s833_s24, %s833_s24, %s834_s25  }
   0x9   :  { %s835_s28 = smov [#allocation7]  }
   0xa   :  { %s44_s29 = sshll.u32 %s835_s28, 4  ;;  %s45_s29 = int_to_ptr.vmem [resolvable:$true] %s44_s29 }
   0xb   :  { %47 = dma.hbm_to_vmem [thread:$0]  %s43_s27, 32, %s45_s29, [#allocation6]  }
   0xc   :  { %823 = dma.done.wait [#allocation3], 768  }
   0xd   :  { %824 = vsyncadd [#allocation3], 4294966528 }
   0xe   :  { %825 = dma.done.wait [#allocation6], 2080  }
   0xf   :  { %826 = vsyncadd [#allocation6], 4294965216  ;;  %v80_v0 = vld [vmem:[#allocation5 + $0x70] sm:$0xff]  ;;  %v78_v1 = vld [vmem:[#allocation5 + $0x60] sm:$0xff]  ;;  %vm88_vm0 = vcmask 523264   ;;  %s836_s0 = smov 64  }
  0x10   :  { %115 = vmatpush.msra.mxu0 %v80_v0  ;;  %v76_v2 = vld [vmem:[#allocation5 + $0x50] sm:$0xff]  ;;  %v74_v3 = vld [vmem:[#allocation5 + $0x40] sm:$0xff]  ;;  %v61_v14 = vld [vmem:[#allocation2 + $0x8] sm:$0xff]  ;;  %vm205_vm1 = vcmask 64512   ;;  %s837_s2 = smov [#allocation8]   ;;  %s653_s6 = sshll.u32 %s966_s3, 4  ;;  %s654_s6 = int_to_ptr.hbm [resolvable:$true] %s653_s6 }
  0x11   :  { %v72_v4 = vld [vmem:[#allocation5 + $0x30] sm:$0xff]  ;;  %v70_v5 = vld [vmem:[#allocation5 + $0x20] sm:$0xff]  ;;  %v63_v16 = vld [vmem:[#allocation2 + $0x18] sm:$0xff]  ;;  %s651_s30 = sshll.u32 %s837_s2, 4  ;;  %s652_s30 = int_to_ptr.vmem [resolvable:$true] %s651_s30 }
  0x12   :  { %116 = vmatpush.msra.mxu0 %v78_v1  ;;  %v68_v6 = vld [vmem:[#allocation5 + $0x10] sm:$0xff]  ;;  %v66_v7 = vld [vmem:[#allocation5] sm:$0xff]  ;;  %v65_v20 = vld [vmem:[#allocation2 + $0x28] sm:$0xff] }
  0x13   :  { %v60_v8 = vld [vmem:[#allocation2] sm:$0xff]  ;;  %v868_v9 = vld [vmem:[#allocation7] sm:$0x3]  ;;  %v81_v22 = vld [vmem:[#allocation5 + $0x78] sm:$0xff] }
  0x14   :  { %117 = vmatpush.msra.mxu0 %v76_v2  ;;  %v871_v10 = vperm.slane %v868_v9, 0  ;;  %v62_v15 = vld [vmem:[#allocation2 + $0x10] sm:$0xff]  ;;  %v64_v17 = vld [vmem:[#allocation2 + $0x20] sm:$0xff]  ;;  %150 = vmatpush.msra.mxu1 %v81_v22  ;;  %v79_v23 = vld [vmem:[#allocation5 + $0x68] sm:$0xff]  ;;  %v901_v45 = vperm.slane %v868_v9, 1 }
  0x15   :  { %v77_v24 = vld [vmem:[#allocation5 + $0x58] sm:$0xff]  ;;  %v75_v25 = vld [vmem:[#allocation5 + $0x48] sm:$0xff] }
  0x16   :  { %118 = vmatpush.msra.mxu0 %v74_v3  ;;  %151 = vmatpush.msra.mxu1 %v79_v23  ;;  %v73_v26 = vld [vmem:[#allocation5 + $0x38] sm:$0xff]  ;;  %v71_v27 = vld [vmem:[#allocation5 + $0x28] sm:$0xff] }
  0x17   :  { %v69_v28 = vld [vmem:[#allocation5 + $0x18] sm:$0xff]  ;;  %v67_v29 = vld [vmem:[#allocation5 + $0x8] sm:$0xff] }
  0x18   :  { %119 = vmatpush.msra.mxu0 %v72_v4  ;;  %152 = vmatpush.msra.mxu1 %v77_v24 }
  0x1a   :  { %120 = vmatpush.msra.mxu0 %v70_v5  ;;  %153 = vmatpush.msra.mxu1 %v75_v25 }
  0x1c   :  { %121 = vmatpush.msra.mxu0 %v68_v6  ;;  %154 = vmatpush.msra.mxu1 %v73_v26 }
  0x1e   :  { %122 = vmatpush.msra.mxu0 %v66_v7  ;;  %155 = vmatpush.msra.mxu1 %v71_v27 }
  0x1f   :  { %664 = vmatmul.msk.f32.vlgmr.msra.gmra.mxu0 %vm88_vm0, %v60_v8 }
  0x20   :  { %156 = vmatpush.msra.mxu1 %v69_v28 }
  0x22   :  { %157 = vmatpush.msra.mxu1 %v67_v29 }
  0x23   :  { %670 = vmatmul.msk.f32.vlgmr.msra.gmra.mxu1 %vm88_vm0, %v60_v8 }
  0x27   :  { %665 = vmatmul.msk.f32.gmra.mxu0 %vm88_vm0, %v61_v14 }
  0x2b   :  { %671 = vmatmul.msk.f32.gmra.mxu1 %vm88_vm0, %v61_v14 }
  0x2f   :  { %666 = vmatmul.msk.f32.gmra.mxu0 %vm88_vm0, %v62_v15 }
  0x33   :  { %672 = vmatmul.msk.f32.gmra.mxu1 %vm88_vm0, %v62_v15 }
  0x37   :  { %667 = vmatmul.msk.f32.gmra.mxu0 %vm88_vm0, %v63_v16 }
  0x3b   :  { %673 = vmatmul.msk.f32.gmra.mxu1 %vm88_vm0, %v63_v16 }
  0x3f   :  { %668 = vmatmul.msk.f32.gmra.mxu0 %vm88_vm0, %v64_v17 }
  0x43   :  { %674 = vmatmul.msk.f32.gmra.mxu1 %vm88_vm0, %v64_v17 }
  0x47   :  { %669 = vmatmul.msk.f32.gmra.mxu0 %vm88_vm0, %v65_v20 }
  0x4b   :  { %675 = vmatmul.msk.f32.gmra.mxu1 %vm88_vm0, %v65_v20 }
  0x9c   :  { %v124_v11 = vpop.f32.mrf.mxu0 }
  0x9d   :  { %v125_v12 = vadd.f32 %v124_v11, %v871_v10 }
  0x9f   :  { %178 = vrot.lane.b32.xlu0 %v125_v12, %s836_s0 }
  0xa0   :  { %v159_v46 = vpop.f32.mrf.mxu1 }
  0xa1   :  { %v160_v47 = vadd.f32 %v159_v46, %v901_v45 }
  0xa3   :  { %248 = vmatpush.msra.mxu3 %v160_v47 }
  0xa4   :  { %v127_v30 = vpop.f32.mrf.mxu0 }
  0xa5   :  { %v128_v44 = vadd.f32 %v127_v30, %v871_v10 }
  0xac   :  { %v130_v34 = vpop.f32.mrf.mxu0 }
  0xad   :  { %v131_v35 = vadd.f32 %v130_v34, %v871_v10 }
  0xaf   :  { %329 = vrot.lane.b32.xlu2 %v131_v35, %s836_s0 }
  0xb4   :  { %v133_v38 = vpop.f32.mrf.mxu0 }
  0xb5   :  { %v134_v39 = vadd.f32 %v133_v38, %v871_v10 }
  0xb7   :  { %404 = vrot.lane.b32.xlu2 %v134_v39, %s836_s0 }
  0xbc   :  { %v136_v40 = vpop.f32.mrf.mxu0 }
  0xbd   :  { %v137_v41 = vadd.f32 %v136_v40, %v871_v10 }
  0xbf   :  { %479 = vrot.lane.b32.xlu2 %v137_v41, %s836_s0 }
  0xc4   :  { %v139_v42 = vpop.f32.mrf.mxu0 }
  0xc5   :  { %v140_v43 = vadd.f32 %v139_v42, %v871_v10  ;;  %v162_v42 = vpop.f32.mrf.mxu1 }
  0xc7   :  { %554 = vrot.lane.b32.xlu2 %v140_v43, %s836_s0 }
 0x109   :  { %v330_v55 = vpop.permute.xlu2 %329 }
 0x111   :  { %v179_v13 = vpop.permute.xlu0 %178  ;;  %v405_v61 = vpop.permute.xlu2 %404 }
 0x112   :  { %676 = vmatpush.xpose.msk.msra.mxu2 %vm88_vm0, %v179_v13 }
 0x115   :  { %677 = vmatmul.msk.f32.vlgmr.msra.gmra.mxu2 %vm88_vm0, %v125_v12 }
 0x119   :  { %v480_v63 = vpop.permute.xlu2 %479 }
 0x121   :  { %v555_v0 = vpop.permute.xlu2 %554 }
 0x198   :  { %v201_v18 = vpop.f32.mrf.mxu2 }
 0x199   :  { %v204_v19 = vmul.f32 0.17677669, %v201_v18 }
 0x19b   :  { %v206_v21 = vsel %vm205_vm1, %v204_v19, -inf }
 0x19c   :  { %207 = vmax.xlane.f32.xlu0 %v206_v21 }
 0x20f   :  { %v208_v31 = vpop.xlane.xlu0 %207 }
 0x210   :  { %v209_v32 = vsub.f32 %v204_v19, %v208_v31 }
 0x212   :  { %v210_v33 = vmul.f32 1.442695, %v209_v32 }
 0x214   :  { %703 = vpow2.f32 %v210_v33 }
 0x21a   :  { %v704_v36 = vpop.eup %703 }
 0x21b   :  { %v212_v37 = vsel %vm205_vm1, %v704_v36, 0.0 }
 0x21c   :  { %213 = vadd.xlane.f32.xlu1 %v212_v37 }
 0x235   :  { %254 = vrot.lane.b32.xlu1 %v128_v44, %s836_s0 }
 0x28f   :  { %v214_v48 = vpop.xlane.xlu1 %213 }
 0x290   :  { %705 = vrcp.f32 %v214_v48  ;;  %v226_v52 = vand.u32 2147483648, %v214_v48  ;;  %v224_v54 = vand.u32 2147483647, %v214_v48  ;;  %vm220_vm3 = vweird.f32 %v214_v48 }
 0x292   :  { %v227_v57 = vor.u32 1.1754944e-38, %v226_v52  ;;  %vm225_vm5 = vcmp.eq.f32.partialorder %v224_v54, 8.507059e+37 }
 0x296   :  { %v706_v49 = vpop.eup %705 }
 0x297   :  { %v216_v50 = vmul.f32 %v706_v49, %v214_v48  ;;  %vm221_vm2 = vweird.f32 %v706_v49 }
 0x298   :  { %vm222_vm4 = vmor %vm220_vm3, %vm221_vm2 }
 0x299   :  { %v217_v51 = vsub.f32 1.0, %v216_v50 }
 0x29b   :  { %v218_v53 = vmul.f32 %v706_v49, %v217_v51 }
 0x29d   :  { %v219_v56 = vadd.f32 %v706_v49, %v218_v53 }
 0x29f   :  { %v223_v58 = vsel %vm222_vm4, %v706_v49, %v219_v56 }
 0x2a0   :  { %v228_v59 = vsel %vm225_vm5, %v227_v57, %v223_v58 }
 0x2a1   :  { %v229_v60 = vmul.f32 %v704_v36, %v228_v59 }
 0x2a3   :  { %678 = vmatmul.msk.f32.vlgmr.msra.gmra.mxu3 %vm205_vm1, %v229_v60 }
 0x2a7   :  { %v255_v62 = vpop.permute.xlu1 %254 }
 0x2a8   :  { %679 = vmatpush.xpose.msk.msrb.mxu3 %vm88_vm0, %v255_v62 }
 0x2ab   :  { %680 = vmatmul.msk.f32.vlgmr.msrb.gmra.mxu3 %vm88_vm0, %v128_v44  ;;  %v165_v44 = vpop.f32.mrf.mxu1 }
 0x2ac   :  { %682 = vmatpush.xpose.msk.msra.mxu3 %vm88_vm0, %v330_v55  ;;  %v166_v46 = vadd.f32 %v165_v44, %v901_v45 }
 0x2b0   :  { %685 = vmatpush.xpose.msk.msrb.mxu3 %vm88_vm0, %v405_v61 }
 0x2b3   :  { %683 = vmatmul.msk.f32.vlgmr.msra.gmra.mxu3 %vm88_vm0, %v131_v35  ;;  %v168_v52 = vpop.f32.mrf.mxu1 }
 0x2b4   :  { %688 = vmatpush.xpose.msk.msra.mxu3 %vm88_vm0, %v480_v63 }
 0x2bb   :  { %686 = vmatmul.msk.f32.vlgmr.msrb.gmra.mxu3 %vm88_vm0, %v134_v39 }
 0x2bc   :  { %691 = vmatpush.xpose.msk.msrb.mxu3 %vm88_vm0, %v555_v0  ;;  %v169_v0 = vadd.f32 %v168_v52, %v901_v45 }
 0x2c3   :  { %689 = vmatmul.msk.f32.vlgmr.msra.gmra.mxu3 %vm88_vm0, %v137_v41 }
 0x2cb   :  { %692 = vmatmul.msk.f32.vlgmr.msrb.gmra.mxu3 %vm88_vm0, %v140_v43  ;;  %v163_v43 = vadd.f32 %v162_v42, %v901_v45 }
 0x2cd   :  { %323 = vmatpush.msrb.mxu2 %v163_v43 }
 0x2cf   :  { %398 = vmatpush.msra.mxu2 %v166_v46 }
 0x326   :  { %v915_v1 = vpop.f32.mrf.mxu3 }
 0x32e   :  { %v277_v2 = vpop.f32.mrf.mxu3 }
 0x32f   :  { %v280_v3 = vmul.f32 0.17677669, %v277_v2 }
 0x331   :  { %v281_v4 = vsel %vm205_vm1, %v280_v3, -inf }
 0x332   :  { %282 = vmax.xlane.f32.xlu2 %v281_v4 }
 0x336   :  { %v352_v5 = vpop.f32.mrf.mxu3 }
 0x337   :  { %v355_v6 = vmul.f32 0.17677669, %v352_v5 }
 0x339   :  { %v356_v7 = vsel %vm205_vm1, %v355_v6, -inf }
 0x33a   :  { %357 = vmax.xlane.f32.xlu1 %v356_v7 }
 0x33e   :  { %v427_v8 = vpop.f32.mrf.mxu3 }
 0x33f   :  { %v430_v9 = vmul.f32 0.17677669, %v427_v8 }
 0x341   :  { %v431_v10 = vsel %vm205_vm1, %v430_v9, -inf }
 0x342   :  { %432 = vmax.xlane.f32.xlu0 %v431_v10 }
 0x346   :  { %v502_v11 = vpop.f32.mrf.mxu3 }
 0x347   :  { %v505_v12 = vmul.f32 0.17677669, %v502_v11 }
 0x349   :  { %v506_v13 = vsel %vm205_vm1, %v505_v12, -inf }
 0x34a   :  { %507 = vmax.xlane.f32.xlu0 %v506_v13 }
 0x34e   :  { %v577_v14 = vpop.f32.mrf.mxu3 }
 0x34f   :  { %v580_v15 = vmul.f32 0.17677669, %v577_v14 }
 0x351   :  { %v581_v16 = vsel %vm205_vm1, %v580_v15, -inf }
 0x352   :  { %582 = vmax.xlane.f32.xlu0 %v581_v16 }
 0x3a5   :  { %v283_v17 = vpop.xlane.xlu2 %282 }
 0x3a6   :  { %v284_v18 = vsub.f32 %v280_v3, %v283_v17 }
 0x3a8   :  { %v285_v19 = vmul.f32 1.442695, %v284_v18 }
 0x3aa   :  { %707 = vpow2.f32 %v285_v19 }
 0x3ad   :  { %v358_v20 = vpop.xlane.xlu1 %357 }
 0x3ae   :  { %v359_v21 = vsub.f32 %v355_v6, %v358_v20  ;;  %v171_v6 = vpop.f32.mrf.mxu1 }
 0x3af   :  { %v172_v16 = vadd.f32 %v171_v6, %v901_v45 }
 0x3b0   :  { %v708_v22 = vpop.eup %707  ;;  %v360_v23 = vmul.f32 1.442695, %v359_v21 }
 0x3b1   :  { %v287_v24 = vsel %vm205_vm1, %v708_v22, 0.0 }
 0x3b2   :  { %709 = vpow2.f32 %v360_v23  ;;  %288 = vadd.xlane.f32.xlu2 %v287_v24 }
 0x3b5   :  { %v433_v25 = vpop.xlane.xlu0 %432 }
 0x3b6   :  { %v434_v26 = vsub.f32 %v430_v9, %v433_v25  ;;  %v174_v23 = vpop.f32.mrf.mxu1 }
 0x3b8   :  { %v923_v27 = vpop.eup %709  ;;  %v435_v28 = vmul.f32 1.442695, %v434_v26 }
 0x3b9   :  { %v362_v29 = vsel %vm205_vm1, %v923_v27, 0.0 }
 0x3ba   :  { %711 = vpow2.f32 %v435_v28  ;;  %363 = vadd.xlane.f32.xlu0 %v362_v29 }
 0x3bd   :  { %v508_v30 = vpop.xlane.xlu0 %507 }
 0x3be   :  { %v509_v31 = vsub.f32 %v505_v12, %v508_v30  ;;  %v175_v30 = vadd.f32 %v174_v23, %v901_v45 }
 0x3c0   :  { %v927_v32 = vpop.eup %711  ;;  %v510_v33 = vmul.f32 1.442695, %v509_v31 }
 0x3c1   :  { %v437_v34 = vsel %vm205_vm1, %v927_v32, 0.0 }
 0x3c2   :  { %713 = vpow2.f32 %v510_v33  ;;  %438 = vadd.xlane.f32.xlu1 %v437_v34 }
 0x3c5   :  { %v583_v35 = vpop.xlane.xlu0 %582 }
 0x3c6   :  { %v584_v36 = vsub.f32 %v580_v15, %v583_v35 }
 0x3c8   :  { %v931_v37 = vpop.eup %713  ;;  %v585_v38 = vmul.f32 1.442695, %v584_v36 }
 0x3c9   :  { %v512_v39 = vsel %vm205_vm1, %v931_v37, 0.0 }
 0x3ca   :  { %715 = vpow2.f32 %v585_v38  ;;  %513 = vadd.xlane.f32.xlu2 %v512_v39 }
 0x3d0   :  { %v935_v40 = vpop.eup %715 }
 0x3d1   :  { %v587_v41 = vsel %vm205_vm1, %v935_v40, 0.0 }
 0x3d2   :  { %588 = vadd.xlane.f32.xlu0 %v587_v41 }
 0x425   :  { %v289_v47 = vpop.xlane.xlu2 %288 }
 0x426   :  { %717 = vrcp.f32 %v289_v47  ;;  %v301_v54 = vand.u32 2147483648, %v289_v47  ;;  %v299_v55 = vand.u32 2147483647, %v289_v47  ;;  %vm295_vm7 = vweird.f32 %v289_v47 }
 0x428   :  { %v302_v58 = vor.u32 1.1754944e-38, %v301_v54  ;;  %vm300_vm9 = vcmp.eq.f32.partialorder %v299_v55, 8.507059e+37 }
 0x42c   :  { %v718_v48 = vpop.eup %717 }
 0x42d   :  { %v291_v49 = vmul.f32 %v718_v48, %v289_v47  ;;  %v364_v50 = vpop.xlane.xlu0 %363  ;;  %vm296_vm6 = vweird.f32 %v718_v48 }
 0x42e   :  { %719 = vrcp.f32 %v364_v50  ;;  %vm297_vm8 = vmor %vm295_vm7, %vm296_vm6  ;;  %v376_v2 = vand.u32 2147483648, %v364_v50  ;;  %v374_v5 = vand.u32 2147483647, %v364_v50  ;;  %vm370_vm11 = vweird.f32 %v364_v50 }
 0x42f   :  { %v292_v51 = vsub.f32 1.0, %v291_v49 }
 0x430   :  { %v377_v9 = vor.u32 1.1754944e-38, %v376_v2  ;;  %vm375_vm13 = vcmp.eq.f32.partialorder %v374_v5, 8.507059e+37 }
 0x431   :  { %v293_v53 = vmul.f32 %v718_v48, %v292_v51 }
 0x433   :  { %v294_v56 = vadd.f32 %v718_v48, %v293_v53 }
 0x434   :  { %v720_v57 = vpop.eup %719 }
 0x435   :  { %v366_v59 = vmul.f32 %v720_v57, %v364_v50  ;;  %v439_v60 = vpop.xlane.xlu1 %438  ;;  %v298_v61 = vsel %vm297_vm8, %v718_v48, %v294_v56  ;;  %vm371_vm10 = vweird.f32 %v720_v57 }
 0x436   :  { %721 = vrcp.f32 %v439_v60  ;;  %v303_v63 = vsel %vm300_vm9, %v302_v58, %v298_v61  ;;  %vm372_vm12 = vmor %vm370_vm11, %vm371_vm10  ;;  %v451_v17 = vand.u32 2147483648, %v439_v60  ;;  %v449_v19 = vand.u32 2147483647, %v439_v60 }
 0x437   :  { %v367_v62 = vsub.f32 1.0, %v366_v59  ;;  %v304_v3 = vmul.f32 %v708_v22, %v303_v63  ;;  %vm445_vm15 = vweird.f32 %v439_v60 }
 0x438   :  { %v452_v22 = vor.u32 1.1754944e-38, %v451_v17  ;;  %vm450_vm3 = vcmp.eq.f32.partialorder %v449_v19, 8.507059e+37 }
 0x439   :  { %v368_v4 = vmul.f32 %v720_v57, %v367_v62  ;;  %681 = vmatmul.msk.f32.vlgmr.msrb.gmra.mxu2 %vm205_vm1, %v304_v3 }
 0x43a   :  { %473 = vmatpush.msrb.mxu2 %v169_v0 }
 0x43b   :  { %v369_v7 = vadd.f32 %v720_v57, %v368_v4 }
 0x43c   :  { %v722_v8 = vpop.eup %721 }
 0x43d   :  { %v373_v10 = vsel %vm372_vm12, %v720_v57, %v369_v7  ;;  %v441_v11 = vmul.f32 %v722_v8, %v439_v60  ;;  %v514_v12 = vpop.xlane.xlu2 %513  ;;  %vm446_vm14 = vweird.f32 %v722_v8 }
 0x43e   :  { %v378_v13 = vsel %vm375_vm13, %v377_v9, %v373_v10  ;;  %723 = vrcp.f32 %v514_v12  ;;  %vm447_vm2 = vmor %vm445_vm15, %vm446_vm14  ;;  %v526_v31 = vand.u32 2147483648, %v514_v12  ;;  %v524_v34 = vand.u32 2147483647, %v514_v12 }
 0x43f   :  { %v442_v14 = vsub.f32 1.0, %v441_v11  ;;  %v379_v15 = vmul.f32 %v923_v27, %v378_v13  ;;  %vm520_vm5 = vweird.f32 %v514_v12 }
 0x440   :  { %v527_v38 = vor.u32 1.1754944e-38, %v526_v31  ;;  %vm525_vm7 = vcmp.eq.f32.partialorder %v524_v34, 8.507059e+37 }
 0x441   :  { %v443_v18 = vmul.f32 %v722_v8, %v442_v14  ;;  %684 = vmatmul.msk.f32.vlgmr.msra.gmra.mxu2 %vm205_vm1, %v379_v15 }
 0x442   :  { %548 = vmatpush.msra.mxu2 %v172_v16 }
 0x443   :  { %v444_v20 = vadd.f32 %v722_v8, %v443_v18 }
 0x444   :  { %v724_v21 = vpop.eup %723 }
 0x445   :  { %v448_v24 = vsel %vm447_vm2, %v722_v8, %v444_v20  ;;  %v516_v25 = vmul.f32 %v724_v21, %v514_v12  ;;  %v589_v26 = vpop.xlane.xlu0 %588  ;;  %vm521_vm4 = vweird.f32 %v724_v21 }
 0x446   :  { %v453_v27 = vsel %vm450_vm3, %v452_v22, %v448_v24  ;;  %725 = vrcp.f32 %v589_v26  ;;  %vm522_vm6 = vmor %vm520_vm5, %vm521_vm4  ;;  %v601_v45 = vand.u32 2147483648, %v589_v26  ;;  %v599_v46 = vand.u32 2147483647, %v589_v26 }
 0x447   :  { %v517_v28 = vsub.f32 1.0, %v516_v25  ;;  %v454_v29 = vmul.f32 %v927_v32, %v453_v27  ;;  %vm595_vm9 = vweird.f32 %v589_v26 }
 0x448   :  { %v602_v48 = vor.u32 1.1754944e-38, %v601_v45  ;;  %vm600_vm11 = vcmp.eq.f32.partialorder %v599_v46, 8.507059e+37 }
 0x449   :  { %v518_v33 = vmul.f32 %v724_v21, %v517_v28  ;;  %687 = vmatmul.msk.f32.vlgmr.msrb.gmra.mxu2 %vm205_vm1, %v454_v29 }
 0x44a   :  { %623 = vmatpush.msrb.mxu2 %v175_v30 }
 0x44b   :  { %v519_v35 = vadd.f32 %v724_v21, %v518_v33 }
 0x44c   :  { %v726_v36 = vpop.eup %725 }
 0x44d   :  { %v523_v39 = vsel %vm522_vm6, %v724_v21, %v519_v35  ;;  %v591_v41 = vmul.f32 %v726_v36, %v589_v26  ;;  %vm596_vm8 = vweird.f32 %v726_v36 }
 0x44e   :  { %v528_v42 = vsel %vm525_vm7, %v527_v38, %v523_v39  ;;  %vm597_vm10 = vmor %vm595_vm9, %vm596_vm8 }
 0x44f   :  { %v592_v43 = vsub.f32 1.0, %v591_v41  ;;  %v529_v32 = vmul.f32 %v931_v37, %v528_v42 }
 0x451   :  { %v593_v44 = vmul.f32 %v726_v36, %v592_v43  ;;  %690 = vmatmul.msk.f32.vlgmr.msra.gmra.mxu2 %vm205_vm1, %v529_v32 }
 0x453   :  { %v594_v47 = vadd.f32 %v726_v36, %v593_v44 }
 0x455   :  { %v598_v49 = vsel %vm597_vm10, %v726_v36, %v594_v47 }
 0x456   :  { %v603_v50 = vsel %vm600_vm11, %v602_v48, %v598_v49 }
 0x457   :  { %v604_v51 = vmul.f32 %v935_v40, %v603_v50 }
 0x459   :  { %693 = vmatmul.msk.f32.vlgmr.msrb.gmra.mxu2 %vm205_vm1, %v604_v51 }
 0x4bc   :  { %v325_v52 = vpop.f32.mrf.mxu2 }
 0x4bd   :  { %629 = vrot.lane.b32.xlu1 %v325_v52, %s836_s0 }
 0x4c4   :  { %v400_v37 = vpop.f32.mrf.mxu2 }
 0x4cc   :  { %v475_v53 = vpop.f32.mrf.mxu2 }
 0x4cd   :  { %633 = vrot.lane.b32.xlu2 %v475_v53, %s836_s0 }
 0x4d4   :  { %v550_v54 = vpop.f32.mrf.mxu2 }
 0x4dc   :  { %v625_v55 = vpop.f32.mrf.mxu2 }
 0x4dd   :  { %637 = vrot.lane.b32.xlu0 %v625_v55, %s836_s0 }
 0x527   :  { %v634_v56 = vpop.permute.xlu2 %633 }
 0x528   :  { %v641_v57 = vsel %vm88_vm0, %v400_v37, %v634_v56 }
 0x529   :  { %644 = vst [vmem:[#allocation8 + $0x8] sm:$0xff] %v641_v57 }
 0x52f   :  { %v630_v58 = vpop.permute.xlu1 %629 }
 0x530   :  { %v640_v40 = vsel %vm88_vm0, %v915_v1, %v630_v58 }
 0x531   :  { %643 = vst [vmem:[#allocation8] sm:$0xff] %v640_v40 }
 0x54f   :  { %v638_v59 = vpop.permute.xlu0 %637 }
 0x550   :  { %v642_v60 = vsel %vm88_vm0, %v550_v54, %v638_v59 }
 0x551   :  { %645 = vst [vmem:[#allocation8 + $0x10] sm:$0xff] %v642_v60 }
 0x552   :  { %656 = dma.vmem_to_hbm [thread:$0]  %s652_s30, 384, %s654_s6, [#allocation4]  }
 0x553   :  { %827 = dma.done.wait [#allocation4], 384  }
 0x554   :  { %828 = vsyncadd [#allocation4], 4294966912 }
 0x555   :  { %661 = vsyncpa [#allocation3], 1 }
 0x556   :  { %662 = vsyncpa [#allocation6], 1 }
 0x557   :  { %663 = vsyncpa [#allocation4], 1 }

</bundles_post_ra>
